<compile_context>
chip_gen: v5e
topology: v5e:2x2
jax: 0.10.0
libtpu: 0.0.40
codegen_flags: <defaults>
</compile_context>

<pallas_src>
import functools

import jax
import jax.numpy as jnp
import numpy as np
from jax.experimental import pallas as pl
from jax.experimental.pallas import tpu as pltpu


def _mfm_kernel(*refs, height, inv_hw):
    """refs = (x_0, ..., x_{height-1}, w1t, w2t, out).

    x_n : (BB, C, HWp)       one scale's feature block (HWp on the lane axis)
    w1t : (C, d)             first 1x1 conv weight, pre-transposed
    w2t : (height, d, C)     second 1x1 conv weight, per-scale, pre-transposed
    out : (BB, C, HWp)
    """
    x_refs = refs[:height]
    w1t_ref = refs[height]
    w2t_ref = refs[height + 1]
    o_ref = refs[height + 2]

    # ---- pooled = (1/HW) * sum_n sum_hw x_n : per-scale lane reductions ----
    pooled = jnp.sum(x_refs[0][...].astype(jnp.float32), axis=-1)        # (BB, C)
    for r in x_refs[1:]:
        pooled = pooled + jnp.sum(r[...].astype(jnp.float32), axis=-1)
    pooled = pooled * inv_hw                                             # (BB, C)

    # ---- tiny MLP: Conv1x1 -> ReLU -> Conv1x1, on the MXU -------------------
    w1t = w1t_ref[...].astype(jnp.float32)                               # (C, d)
    hidden = jnp.maximum(
        jnp.dot(pooled, w1t, preferred_element_type=jnp.float32), 0.0)   # (BB, d)
    logits = [
        jnp.dot(hidden, w2t_ref[n].astype(jnp.float32),
                preferred_element_type=jnp.float32)                      # (BB, C)
        for n in range(height)
    ]

    # ---- softmax over the scale axis (sigmoid shortcut for height == 2) ----
    if height == 2:
        a0 = 1.0 / (1.0 + jnp.exp(logits[1] - logits[0]))
        attn = [a0, 1.0 - a0]
    else:
        m = logits[0]
        for l in logits[1:]:
            m = jnp.maximum(m, l)
        exps = [jnp.exp(l - m) for l in logits]
        denom = exps[0]
        for e in exps[1:]:
            denom = denom + e
        attn = [e / denom for e in exps]

    # ---- out = sum_n x_n * attn_n (native-dtype multiply, f32 accumulation,
    #      no zero-init) -------------------------------------------------------
    x0 = x_refs[0][...]
    acc = (x0 * attn[0][:, :, None].astype(x0.dtype)).astype(jnp.float32)
    for n in range(1, height):
        xn = x_refs[n][...]
        acc = acc + (xn * attn[n][:, :, None].astype(xn.dtype)).astype(jnp.float32)
    o_ref[...] = acc.astype(o_ref.dtype)


def _pick_block_b(B, block_bytes_fn, budget):
    """Largest batch-block whose full working set (double-buffered I/O blocks
    plus in-kernel f32 temporaries) fits `budget`, preferring >= 4 grid steps
    (>= 2 per v7x TensorCore), then >= 2, then any; exact divisors of B are
    preferred within each tier to avoid batch padding."""
    fits = [bb for bb in range(1, B + 1) if block_bytes_fn(bb) <= budget]
    if not fits:
        return 1
    for min_steps in (4, 2, 1):
        pool = [bb for bb in fits if pl.cdiv(B, bb) >= min_steps]
        if pool:
            divs = [bb for bb in pool if B % bb == 0]
            return max(divs) if divs else max(pool)
    return max(fits)


def mfm_pallas(in_feats, w1, w2):
    """in_feats: list of `height` arrays, each (B, C, H, W) with C == dim.
    w1: (d, dim)          -- mlp first 1x1 conv weight (squeezed)
    w2: (dim*height, d)   -- mlp second 1x1 conv weight (squeezed)
    Returns (B, C, H, W)."""
    height = len(in_feats)
    B, C, H, W = in_feats[0].shape
    HW = H * W
    d = w1.shape[0]
    dtype = in_feats[0].dtype
    itemsize = jnp.dtype(dtype).itemsize

    # ---- lane-dense spatial layout: pad HW up to a multiple of 128 ----------
    HW_pad = max(128, ((HW + 127) // 128) * 128)
    xs = [f.reshape(B, C, HW) for f in in_feats]
    if HW_pad != HW:
        xs = [jnp.pad(x, ((0, 0), (0, 0), (0, HW_pad - HW))) for x in xs]

    # Weights: w1 transposed; w2 split per scale as (height, d, C).
    w1t = jnp.asarray(w1).T                                        # (C, d)
    w2t = jnp.asarray(w2).reshape(height, C, d).transpose(0, 2, 1)  # (height, d, C)

    # ---- generation-aware VMEM budget ----------------------------------------
    try:
        phys_vmem = int(pltpu.get_tpu_info().vmem_capacity_bytes)
    except Exception:
        phys_vmem = 64 << 20                   # conservative: v7x per-TC VMEM
    cap = (96 << 20) if phys_vmem >= (100 << 20) else (48 << 20)

    def block_bytes(bb):
        io = (height + 1) * bb * C * HW_pad * itemsize   # one set of I/O blocks
        temps = 3 * bb * C * HW_pad * 4                  # f32 acc + product/cast temps
        return 2 * io + temps                            # double-buffered I/O + temps

    budget = int(cap * 0.7)
    BB = _pick_block_b(B, block_bytes, budget)

    # ---- pad batch to a multiple of BB (short final block via zero-pad) ------
    n_steps = pl.cdiv(B, BB)
    B_pad = n_steps * BB
    if B_pad != B:
        xs = [jnp.pad(x, ((0, B_pad - B), (0, 0), (0, 0))) for x in xs]

    weight_bytes = (w1t.size + w2t.size) * 4 * 2
    vmem_limit = int(min(cap, max(16 << 20,
                                  block_bytes(BB) + weight_bytes + (4 << 20))))

    x_spec = pl.BlockSpec((BB, C, HW_pad), lambda b: (b, 0, 0))
    out_spec = pl.BlockSpec((BB, C, HW_pad), lambda b: (b, 0, 0))
    w1_spec = pl.BlockSpec((C, d), lambda b: (0, 0))
    w2_spec = pl.BlockSpec((height, d, C), lambda b: (0, 0, 0))

    kernel = functools.partial(_mfm_kernel, height=height, inv_hw=1.0 / HW)

    cost = pl.CostEstimate(
        flops=int(2 * height * B * C * HW + 2 * B * C * d + 2 * B * d * height * C),
        transcendentals=int(B * height * C),
        bytes_accessed=int((height + 1) * B * C * HW * itemsize),
    )

    out = pl.pallas_call(
        kernel,
        out_shape=jax.ShapeDtypeStruct((B_pad, C, HW_pad), dtype),
        grid_spec=pltpu.PrefetchScalarGridSpec(
            num_scalar_prefetch=0,
            grid=(n_steps,),
            in_specs=[x_spec] * height + [w1_spec, w2_spec],
            out_specs=out_spec,
        ),
        compiler_params=pltpu.CompilerParams(
            dimension_semantics=("parallel",),
            vmem_limit_bytes=vmem_limit,
        ),
        cost_estimate=cost,
    )(*xs, w1t, w2t)

    out = out[:B, :, :HW]
    return out.reshape(B, C, H, W)


def mfm_reference(in_feats, w1, w2):
    """Pure-JAX reference matching the PyTorch forward (inc == dim everywhere)."""
    height = len(in_feats)
    B, C, H, W = in_feats[0].shape
    x = jnp.stack(in_feats, axis=1)                              # (B, N, C, H, W)
    feats_sum = jnp.sum(x, axis=1)                               # (B, C, H, W)
    pooled = jnp.mean(feats_sum, axis=(2, 3))                    # (B, C)
    hidden = jax.nn.relu(pooled @ w1.T)                          # (B, d)
    logits = hidden @ w2.T                                       # (B, N*C)
    logits = logits.reshape(B, height, C)
    attn = jax.nn.softmax(logits, axis=1)                        # (B, N, C)
    out = jnp.sum(x * attn[:, :, :, None, None], axis=1)         # (B, C, H, W)
    return out


if __name__ == "__main__":
    # Module configuration: MFM(inc=(dim, dim), dim=16, reduction=8)
    dim = 16
    height = 2
    reduction = 8
    d = max(int(dim / reduction), 4)                             # = 4
    B, H, W = 4, 16, 16

    key = jax.random.PRNGKey(0)
    k0, k1, kw1, kw2 = jax.random.split(key, 4)

    # two input feature maps, both already at `dim` channels (Identity branches)
    f0 = jax.random.normal(k0, (B, dim, H, W), dtype=jnp.float32)
    f1 = jax.random.normal(k1, (B, dim, H, W), dtype=jnp.float32)

    # deterministic MLP weights (Conv2d 1x1, bias=False) -> squeezed 2-D matrices
    w1 = 0.3 * jax.random.normal(kw1, (d, dim), dtype=jnp.float32)
    w2 = 0.3 * jax.random.normal(kw2, (dim * height, d), dtype=jnp.float32)

    out = mfm_pallas([f0, f1], w1, w2)
    out = jax.block_until_ready(out)

    ref = jax.block_until_ready(mfm_reference([f0, f1], w1, w2))
    np.testing.assert_allclose(np.asarray(out), np.asarray(ref),
                               rtol=1e-4, atol=1e-5)

    print("KERNEL_OK")
</pallas_src>

<mosaic_0001>
module attributes {stable_mosaic.version = 11 : i64} {
  func.func @_mfm_kernel(%arg0: i32, %arg1: memref<1x16x256xf32, #tpu.memory_space<vmem>>, %arg2: memref<1x16x256xf32, #tpu.memory_space<vmem>>, %arg3: memref<16x4xf32, #tpu.memory_space<vmem>>, %arg4: memref<2x4x16xf32, #tpu.memory_space<vmem>>, %arg5: memref<1x16x256xf32, #tpu.memory_space<vmem>>) attributes {dimension_semantics = [#tpu.dimension_semantics<parallel>], iteration_bounds = array<i64: 4>, scalar_prefetch = 0 : i64, scratch_operands = 0 : i64, tpu.core_type = #tpu.core_type<tc>, window_params = [{transform_indices = @transform_0, window_bounds = array<i64: 1, 16, 256>}, {transform_indices = @transform_1, window_bounds = array<i64: 1, 16, 256>}, {pipeline_mode = #tpu.pipeline_mode<synchronous>, transform_indices = @transform_2, window_bounds = array<i64: 16, 4>}, {pipeline_mode = #tpu.pipeline_mode<synchronous>, transform_indices = @transform_3, window_bounds = array<i64: 2, 4, 16>}, {transform_indices = @transform_4, window_bounds = array<i64: 1, 16, 256>}]} {
    %c0 = arith.constant 0 : index
    %c0_0 = arith.constant 0 : index
    %c0_1 = arith.constant 0 : index
    %0 = vector.load %arg1[%c0, %c0_0, %c0_1] : memref<1x16x256xf32, #tpu.memory_space<vmem>>, vector<1x16x256xf32>
    %cst = arith.constant dense<0.000000e+00> : vector<1x16xf32>
    %1 = vector.multi_reduction <add>, %0, %cst [2] : vector<1x16x256xf32> to vector<1x16xf32>
    %c0_2 = arith.constant 0 : index
    %c0_3 = arith.constant 0 : index
    %c0_4 = arith.constant 0 : index
    %2 = vector.load %arg2[%c0_2, %c0_3, %c0_4] : memref<1x16x256xf32, #tpu.memory_space<vmem>>, vector<1x16x256xf32>
    %cst_5 = arith.constant dense<0.000000e+00> : vector<1x16xf32>
    %3 = vector.multi_reduction <add>, %2, %cst_5 [2] : vector<1x16x256xf32> to vector<1x16xf32>
    %4 = arith.addf %1, %3 : vector<1x16xf32>
    %cst_6 = arith.constant 3.906250e-03 : f32
    %5 = vector.broadcast %cst_6 : f32 to vector<1x16xf32>
    %6 = arith.mulf %4, %5 : vector<1x16xf32>
    %c0_7 = arith.constant 0 : index
    %c0_8 = arith.constant 0 : index
    %7 = vector.load %arg3[%c0_7, %c0_8] : memref<16x4xf32, #tpu.memory_space<vmem>>, vector<16x4xf32>
    %cst_9 = arith.constant dense<0.000000e+00> : vector<1x4xf32>
    %8 = tpu.matmul %6, %7, %cst_9 {dimension_numbers = #tpu.dot_dimension_numbers<[1], [0], [0], [1], [0, 0, 1, 1], [], []>} : vector<1x16xf32>, vector<16x4xf32>, vector<1x4xf32> -> vector<1x4xf32>
    %cst_10 = arith.constant 0.000000e+00 : f32
    %9 = vector.broadcast %cst_10 : f32 to vector<1x4xf32>
    %10 = arith.maximumf %8, %9 : vector<1x4xf32>
    %c0_11 = arith.constant 0 : index
    %c0_12 = arith.constant 0 : index
    %c0_13 = arith.constant 0 : index
    %11 = vector.load %arg4[%c0_11, %c0_12, %c0_13] : memref<2x4x16xf32, #tpu.memory_space<vmem>>, vector<1x4x16xf32>
    %12 = vector.shape_cast %11 : vector<1x4x16xf32> to vector<4x16xf32>
    %cst_14 = arith.constant dense<0.000000e+00> : vector<1x16xf32>
    %13 = tpu.matmul %10, %12, %cst_14 {dimension_numbers = #tpu.dot_dimension_numbers<[1], [0], [0], [1], [0, 0, 1, 1], [], []>} : vector<1x4xf32>, vector<4x16xf32>, vector<1x16xf32> -> vector<1x16xf32>
    %c1 = arith.constant 1 : index
    %c0_15 = arith.constant 0 : index
    %c0_16 = arith.constant 0 : index
    %14 = vector.load %arg4[%c1, %c0_15, %c0_16] : memref<2x4x16xf32, #tpu.memory_space<vmem>>, vector<1x4x16xf32>
    %15 = vector.shape_cast %14 : vector<1x4x16xf32> to vector<4x16xf32>
    %cst_17 = arith.constant dense<0.000000e+00> : vector<1x16xf32>
    %16 = tpu.matmul %10, %15, %cst_17 {dimension_numbers = #tpu.dot_dimension_numbers<[1], [0], [0], [1], [0, 0, 1, 1], [], []>} : vector<1x4xf32>, vector<4x16xf32>, vector<1x16xf32> -> vector<1x16xf32>
    %17 = arith.subf %16, %13 : vector<1x16xf32>
    %18 = math.exp %17 : vector<1x16xf32>
    %cst_18 = arith.constant 1.000000e+00 : f32
    %19 = vector.broadcast %cst_18 : f32 to vector<1x16xf32>
    %20 = arith.addf %19, %18 : vector<1x16xf32>
    %cst_19 = arith.constant 1.000000e+00 : f32
    %21 = vector.broadcast %cst_19 : f32 to vector<1x16xf32>
    %22 = arith.divf %21, %20 : vector<1x16xf32>
    %cst_20 = arith.constant 1.000000e+00 : f32
    %23 = vector.broadcast %cst_20 : f32 to vector<1x16xf32>
    %24 = arith.subf %23, %22 : vector<1x16xf32>
    %c0_21 = arith.constant 0 : index
    %c0_22 = arith.constant 0 : index
    %c0_23 = arith.constant 0 : index
    %25 = vector.load %arg1[%c0_21, %c0_22, %c0_23] : memref<1x16x256xf32, #tpu.memory_space<vmem>>, vector<1x16x256xf32>
    %26 = vector.shape_cast %22 : vector<1x16xf32> to vector<1x16x1xf32>
    %27 = vector.broadcast %26 : vector<1x16x1xf32> to vector<1x16x256xf32>
    %28 = arith.mulf %25, %27 : vector<1x16x256xf32>
    %c0_24 = arith.constant 0 : index
    %c0_25 = arith.constant 0 : index
    %c0_26 = arith.constant 0 : index
    %29 = vector.load %arg2[%c0_24, %c0_25, %c0_26] : memref<1x16x256xf32, #tpu.memory_space<vmem>>, vector<1x16x256xf32>
    %30 = vector.shape_cast %24 : vector<1x16xf32> to vector<1x16x1xf32>
    %31 = vector.broadcast %30 : vector<1x16x1xf32> to vector<1x16x256xf32>
    %32 = arith.mulf %29, %31 : vector<1x16x256xf32>
    %33 = arith.addf %28, %32 : vector<1x16x256xf32>
    %c0_27 = arith.constant 0 : index
    %c0_28 = arith.constant 0 : index
    %c0_29 = arith.constant 0 : index
    %34 = vector.load %arg5[%c0_27, %c0_28, %c0_29] : memref<1x16x256xf32, #tpu.memory_space<vmem>>, vector<1x16x256xf32>
    tpu.vector_store %arg5[%c0_27, %c0_28, %c0_29], %33 {strides = array<i32>} : memref<1x16x256xf32, #tpu.memory_space<vmem>>, vector<1x16x256xf32>,
    return
  }
  func.func @transform_0(%arg0: i32) -> (i32, i32, i32) {
    %c0_i32 = arith.constant 0 : i32
    %c0_i32_0 = arith.constant 0 : i32
    %c0_i32_1 = arith.constant 0 : i32
    return %arg0, %c0_i32, %c0_i32_0 : i32, i32, i32
  }
  func.func @transform_1(%arg0: i32) -> (i32, i32, i32) {
    %c0_i32 = arith.constant 0 : i32
    %c0_i32_0 = arith.constant 0 : i32
    %c0_i32_1 = arith.constant 0 : i32
    return %arg0, %c0_i32, %c0_i32_0 : i32, i32, i32
  }
  func.func @transform_2(%arg0: i32) -> (i32, i32) {
    %c0_i32 = arith.constant 0 : i32
    %c0_i32_0 = arith.constant 0 : i32
    %c0_i32_1 = arith.constant 0 : i32
    return %c0_i32, %c0_i32_0 : i32, i32
  }
  func.func @transform_3(%arg0: i32) -> (i32, i32, i32) {
    %c0_i32 = arith.constant 0 : i32
    %c0_i32_0 = arith.constant 0 : i32
    %c0_i32_1 = arith.constant 0 : i32
    %c0_i32_2 = arith.constant 0 : i32
    return %c0_i32, %c0_i32_0, %c0_i32_1 : i32, i32, i32
  }
  func.func @transform_4(%arg0: i32) -> (i32, i32, i32) {
    %c0_i32 = arith.constant 0 : i32
    %c0_i32_0 = arith.constant 0 : i32
    %c0_i32_1 = arith.constant 0 : i32
    return %arg0, %c0_i32, %c0_i32_0 : i32, i32, i32
  }
}

</mosaic_0001>

<bundles_post_ra>
// kernel: tpu_custom_call.1
= control target key start
LH: loop header
LB: loop body
LE: loop exit
PB: predicated region body
PF: predicated region fallthrough
CT: control target
= control target key end

     0   :  { %s1014_s0 = inlined_call_operand.hbm [shape: f32[4,16,256], index: 0, kind: input, shape index: {}]   ;;  %s1015_s1 = inlined_call_operand.hbm [shape: f32[4,16,256], index: 1, kind: input, shape index: {}]   ;;  %s1016_s2 = inlined_call_operand.vmem [shape: f32[16,4], index: 2, kind: input, shape index: {}]   ;;  %s1017_s3 = inlined_call_operand.vmem [shape: f32[2,4,16], index: 3, kind: input, shape index: {}]   ;;  %s1018_s4 = inlined_call_operand.hbm [shape: f32[4,16,256], index: 4, kind: output, shape index: {}]  }
   0x1   :  { %1019 = sst [smem:[#allocation12_spill]] %s1014_s0 }
   0x2   :  { %9 = vsyncpa [#allocation3], 0 }
   0x3   :  { %11 = vsyncpa [#allocation3 + $0x1], 0 }
   0x4   :  { %12 = vsyncpa [#allocation6], 0 }
   0x5   :  { %14 = vsyncpa [#allocation6 + $0x1], 0 }
   0x6   :  { %15 = vsyncpa [#allocation4], 0 }
   0x7   :  { %17 = vsyncpa [#allocation4 + $0x1], 0  ;;  %s799_s15 = smov 0   ;;  %s801_s16 = smov 0  }
   0x8   :  { %s803_s17 = smov 0   ;;  %s805_s18 = smov 0  }
   0x9 LB: > { %s820_s19 = sadd.s32 4294967295, %s768_s18   ;;  %s547_s20 = sadd.s32 4294967294, %s768_s18   ;;  %s768_s18 = sphi %s805_s18, %s1032_s18   ;;  %s764_s17 = sphi %s803_s17, %s1031_s17   ;;  %s760_s16 = sphi %s801_s16, %s1030_s16   ;;  %s756_s15 = sphi %s799_s15, %s1029_s15  }
   0xa   : > { %s824_s21 = sadd.s32 1, %s768_s18   ;;  %s30_s22 = sadd.s32 1, %s764_s17 }
   0xb   : > { %s27_s23 = ssub.s32 %s768_s18, %s824_s21  ;;  %p37_p0 = scmp.ne.s32.totalorder %s764_s17, %s760_s16 }
   0xc   : > { %p28_p1 = scmp.eq.s32.totalorder %s27_s23, 0  ;;  %p38_p2 = scmp.eq.s32.totalorder %s768_s18, 0 }
   0xd   : > { %p43_p3 = scmp.ne.s32.totalorder %s760_s16, %s756_s15  ;;  %p44_p4 = scmp.eq.s32.totalorder %s820_s19, 0 }
   0xe   : > { %s836_s24 = scalar_select %p28_p1, %s764_s17, %s30_s22  }
   0xf   : > { %p838_p5 = por %p38_p2, %p37_p0  ;;  %p842_p6 = por %p44_p4, %p43_p3 }
  0x10   : > { %1020 = sst [smem:[#allocation11_spill]] %s836_s24  ;;  %p135_p7 = scmp.eq.s32.totalorder %s820_s19, 3 }
  0x11   : > { %p141_p8 = scmp.eq.s32.totalorder %s547_s20, 3  ;;  %p591_p9 = scmp.lt.s32.totalorder %s768_s18, 4 }
  0x12   : > { %p848_p10 = por %p135_p7, %p37_p0  ;;  %s857_s29 = sand.u32 1, %s764_s17  }
  0x13   : > { %p852_p11 = por %p141_p8, %p43_p3  ;;  %s571_s30 = sshll.u32 %s768_s18, 5 }
  0x14   : > { %s550_s5 = sshll.u32 %s857_s29, 5  ;;  %s1025_s0 = sld [smem:[#allocation12_spill]] }
  0x15   : > { %s171_s10 = scalar_lea.vmem [#allocation2], %s550_s5  ;;  %p870_p12 = pnand %p591_p9, %p838_p5 }
  0x16   : > { %s179_s11 = sshll.u32 %s171_s10, 4  ;;  %p556_p13 = scmp.ge.s32.totalorder %s768_s18, 1  ;;  %s180_s11 = int_to_ptr.vmem [resolvable:$true] %s179_s11 }
  0x17   : > { %p209_p0 = scmp.lt.s32.totalorder %s768_s18, 5  ;;  %s168_s13 = scalar_lea.sflag [#allocation3], %s857_s29 }
  0x18   : > { %p642_p2 = pneg %p870_p12 }
  0x1a   : > { %s176_s8 = scalar_lea.hbm %s1025_s0, %s571_s30  ;;  %s645_s25 = scalar_lea.hbm %s1025_s0, 128 }
  0x1b   : > { %s177_s9 = sshll.u32 %s176_s8, 4  ;;  %s178_s9 = int_to_ptr.hbm [resolvable:$true] %s177_s9 }
  0x1c   : > { %s638_s14 = sshra.s32 %s178_s9, 4  ;;  %s639_s14 = int_to_ptr.hbm [resolvable:$true] %s638_s14 }
  0x1d   : > { %s640_s20 = scalar_lea.hbm %s639_s14, 32  ;;  %p646_p5 = scmp.lt.s32.totalorder %s639_s14, %s1025_s0 }
  0x1e   : > { %p641_p1 = scmp.ne.s32.totalorder %s639_s14, %s640_s20  ;;  %p647_p7 = scmp.lt.s32.totalorder %s645_s25, %s640_s20 }
  0x20   : > { %p643_p3 = pnand %p642_p2, %p641_p1  ;;  %p648_p8 = por %p647_p7, %p646_p5 }
  0x22   : > { %p644_p4 = pneg %p643_p3 }
  0x24   : > { %p649_p9 = pnand %p648_p8, %p644_p4 }
  0x26   : > { %652 = shalt.err (!%p649_p9)
}
  0x27   : > { %s770_s8 = smov 256   ;;  %s771_s10 = smov 16  }
  0x28   : > { %583 = dma.hbm_to_vmem [thread:$0]  (!%p870_p12), %s178_s9, 512, %s180_s11, %s168_s13, %s770_s8, %s770_s8, %s771_s10  }
  0x29   : > { %p894_p1 = pnand %p556_p13, %p209_p0  ;;  %s198_s23 = scalar_lea.hbm %s1015_s1, %s571_s30 }
  0x2a   : > { %s199_s25 = sshll.u32 %s198_s23, 4  ;;  %s193_s6 = scalar_lea.vmem [#allocation5], %s550_s5  ;;  %s200_s25 = int_to_ptr.hbm [resolvable:$true] %s199_s25 }
  0x2b   : > { %s201_s7 = sshll.u32 %s193_s6, 4  ;;  %s190_s0 = scalar_lea.sflag [#allocation6], %s857_s29  ;;  %s202_s7 = int_to_ptr.vmem [resolvable:$true] %s201_s7 }
  0x2c   : > { %s668_s24 = sshra.s32 %s200_s25, 4  ;;  %s675_s14 = scalar_lea.hbm %s1015_s1, 128  ;;  %s669_s24 = int_to_ptr.hbm [resolvable:$true] %s668_s24 }
  0x2d   : > { %s670_s9 = scalar_lea.hbm %s669_s24, 32  ;;  %p676_p4 = scmp.lt.s32.totalorder %s669_s24, %s1015_s1 }
  0x2e   : > { %p671_p3 = scmp.ne.s32.totalorder %s669_s24, %s670_s9  ;;  %p677_p5 = scmp.lt.s32.totalorder %s675_s14, %s670_s9 }
  0x30   : > { %p673_p13 = pnand %p671_p3, %p642_p2  ;;  %p678_p7 = por %p677_p5, %p676_p4 }
  0x32   : > { %p674_p0 = pneg %p673_p13 }
  0x34   : > { %p679_p8 = pnand %p678_p7, %p674_p0 }
  0x36   : > { %682 = shalt.err (!%p679_p8)
}
  0x37   : > { %586 = dma.hbm_to_vmem [thread:$0]  (!%p870_p12), %s200_s25, 512, %s202_s7, %s190_s0, %s770_s8, %s770_s8, %s771_s10  }
  0x38   : > { %213 = sbr.rel (%p894_p1) target bundleno = 619 (0x26b), region = 36  ;;  %s920_s29 = sand.u32 (!%p894_p1), 1, %s760_s16  }
  0x39   : > { %s923_s5 = sshll.u32 (!%p894_p1), %s920_s29, 5  ;;  %s216_s24 = scalar_lea.sflag (!%p894_p1), [#allocation3], %s920_s29 }
  0x3a   : > { %s219_s23 = scalar_lea.vmem (!%p894_p1), [#allocation2], %s923_s5 }
  0x3d   : > { %743 = dma.done.wait (%p842_p6), %s216_s24, 512  }
  0x3e   : > { %745 = vsyncadd (%p842_p6), %s216_s24, 4294966784  ;;  %s226_s0 = scalar_lea.sflag [#allocation6], %s920_s29  ;;  %s229_s12 = scalar_lea.vmem [#allocation5], %s923_s5 }
  0x3f   : > { %747 = dma.done.wait (%p842_p6), %s226_s0, 512  }
  0x40   : > { %749 = vsyncadd (%p842_p6), %s226_s0, 4294966784  ;;  %v937_v0 = vld [vmem:[%s229_s12] sm:$0xff]  ;;  %v939_v1 = vld [vmem:[%s229_s12 + $0x8] sm:$0xff]  ;;  %v288_v16 = vlaneseq  ;;  %vm293_vm0 = vcmask 130112   ;;  %vm295_vm1 = vcmask 130048   ;;  %vm324_vm2 = vcmask 1043456  }
  0x41   : > { %v941_v2 = vld [vmem:[%s219_s23] sm:$0xff]  ;;  %v274_v3 = vadd.f32 %v939_v1, %v937_v0  ;;  %v945_v4 = vld [vmem:[%s219_s23 + $0x8] sm:$0xff]  ;;  %v949_v6 = vld [vmem:[%s229_s12 + $0x10] sm:$0xff]  ;;  %vm320_vm3 = vcmask 31744   ;;  %s573_s11 = sshll.u32 %s820_s19, 5  ;;  %s259_s20 = scalar_lea.vmem [#allocation7], %s923_s5 }
  0x42   : > { %v264_v5 = vadd.f32 %v945_v4, %v941_v2  ;;  %v951_v7 = vld [vmem:[%s229_s12 + $0x18] sm:$0xff]  ;;  %v953_v8 = vld [vmem:[%s219_s23 + $0x10] sm:$0xff]  ;;  %v285_v12 = vld [vmem:[%s1016_s2 + $0x8] sm:$0xff]  ;;  %v289_v18 = vand.u32 127, %v288_v16  ;;  %v395_v32 = vshrl.u32 %v288_v16, 7  ;;  %s447_s30 = scalar_lea.hbm %s1018_s4, %s573_s11  ;;  %s448_s24 = sshll.u32 %s259_s20, 4  ;;  %s449_s24 = int_to_ptr.vmem [resolvable:$true] %s448_s24 }
  0x43   : > { %275 = vadd.xlane.f32.xlu1 %v274_v3  ;;  %v955_v9 = vld [vmem:[%s219_s23 + $0x18] sm:$0xff]  ;;  %v277_v10 = vadd.f32 %v951_v7, %v949_v6  ;;  %312 = vmatpush.msra.mxu0 %v285_v12  ;;  %v284_v13 = vld [vmem:[%s1016_s2] sm:$0xff]  ;;  %s450_s19 = sshll.u32 %s447_s30, 4  ;;  %s436_s5 = scalar_lea.sflag [#allocation4], %s920_s29  ;;  %s451_s19 = int_to_ptr.hbm [resolvable:$true] %s450_s19 }
  0x44   : > { %265 = vadd.xlane.f32.xlu0 %v264_v5  ;;  %v267_v11 = vadd.f32 %v955_v9, %v953_v8  ;;  %v291_v22 = vadd.s32 4294967288, %v289_v18  ;;  %v319_v28 = vld [vmem:[%s1017_s3] sm:$0xf]  ;;  %v563_v29 = vld [vmem:[%s1017_s3 + $0x4] sm:$0xf]  ;;  %629 = vset.pattern.permute.xlu2 %v395_v32  ;;  %v402_v33 = vadd.s32 8, %v395_v32 }
  0x45   : > { %313 = vmatpush.msra.mxu0 %v284_v13  ;;  %561 = vmatpush.msk.msra.mxu1 %vm324_vm2, %v319_v28  ;;  %s712_s23 = sshra.s32 %s451_s19, 4  ;;  %s718_s8 = scalar_lea.hbm %s1018_s4, 128  ;;  %s713_s23 = int_to_ptr.hbm [resolvable:$true] %s712_s23 }
  0x46   : > { %564 = vmatpush.msk.msra.mxu2 %vm324_vm2, %v563_v29  ;;  %631 = vset.pattern.permute.xlu0 %v395_v32  ;;  %s714_s0 = scalar_lea.hbm %s713_s23, 32  ;;  %p719_p9 = scmp.lt.s32.totalorder %s713_s23, %s1018_s4 }
  0x47   : > { %632 = vset.pattern.permute.xlu1 %v402_v33  ;;  %p715_p6 = scmp.ne.s32.totalorder %s713_s23, %s714_s0  ;;  %p720_p1 = scmp.lt.s32.totalorder %s718_s8, %s714_s0 }
  0x49   : > { %p716_p12 = pnand %p715_p6, %p848_p10  ;;  %p721_p3 = por %p720_p1, %p719_p9 }
  0x4b   : > { %278 = vadd.xlane.f32.xlu1 %v277_v10  ;;  %p717_p2 = pneg %p716_p12 }
  0x4c   : > { %268 = vadd.xlane.f32.xlu0 %v267_v11 }
  0x4d   : > { %p722_p13 = pnand %p721_p3, %p717_p2 }
  0xb6   : > { %v276_v14 = vpop.xlane.xlu1 %275 }
  0xb7   : > { %v266_v15 = vpop.xlane.xlu0 %265 }
  0xb8   : > { %v280_v17 = vadd.f32 %v276_v14, %v266_v15 }
  0xba   : > { %v282_v21 = vmul.f32 0.00390625, %v280_v17 }
  0xbc   : > { %v290_v25 = vperm.slane %v282_v21, %v289_v18 }
  0xbe   : > { %v279_v19 = vpop.xlane.xlu1 %278 }
  0xbf   : > { %v269_v20 = vpop.xlane.xlu0 %268 }
  0xc0   : > { %v281_v23 = vadd.f32 %v279_v19, %v269_v20 }
  0xc2   : > { %v283_v24 = vmul.f32 0.00390625, %v281_v23 }
  0xc4   : > { %v292_v26 = vperm.slane %v283_v24, %v291_v22 }
  0xc6   : > { %v294_v27 = vsel %vm293_vm0, %v292_v26, %v290_v25 }
  0xc7   : > { %560 = vmatmul.msk.f32.vlgmr.msra.gmra.mxu0 %vm295_vm1, %v294_v27 }
 0x144   : > { %v315_v30 = vpop.f32.mrf.mxu0 }
 0x145   : > { %v318_v31 = vmax.f32 %v315_v30, 0.0 }
 0x147   : > { %562 = vmatmul.msk.f32.vlgmr.msra.gmra.mxu1 %vm320_vm3, %v318_v31  ;;  %565 = vmatmul.msk.f32.vlgmr.msra.gmra.mxu2 %vm320_vm3, %v318_v31 }
 0x1c4   : > { %v345_v34 = vpop.f32.mrf.mxu1 }
 0x1ca   : > { %v370_v35 = vpop.f32.mrf.mxu2 }
 0x1cb   : > { %v373_v36 = vsub.f32 %v370_v35, %v345_v34 }
 0x1cd   : > { %v374_v37 = vmul.f32 1.442695, %v373_v36 }
 0x1cf   : > { %634 = vpow2.f32 %v374_v37 }
 0x1d5   : > { %v635_v38 = vpop.eup %634 }
 0x1d6   : > { %v376_v39 = vadd.f32 1.0, %v635_v38 }
 0x1d8   : > { %636 = vrcp.f32 %v376_v39  ;;  %v388_v43 = vand.u32 2147483648, %v376_v39  ;;  %v386_v45 = vand.u32 2147483647, %v376_v39  ;;  %vm382_vm5 = vweird.f32 %v376_v39 }
 0x1da   : > { %v389_v47 = vor.u32 1.1754944e-38, %v388_v43  ;;  %vm387_vm7 = vcmp.eq.f32.partialorder %v386_v45, 8.507059e+37 }
 0x1de   : > { %v637_v40 = vpop.eup %636 }
 0x1df   : > { %v378_v41 = vmul.f32 %v637_v40, %v376_v39  ;;  %vm383_vm4 = vweird.f32 %v637_v40 }
 0x1e0   : > { %vm384_vm6 = vmor %vm382_vm5, %vm383_vm4 }
 0x1e1   : > { %v379_v42 = vsub.f32 1.0, %v378_v41 }
 0x1e3   : > { %v380_v44 = vmul.f32 %v637_v40, %v379_v42 }
 0x1e5   : > { %v381_v46 = vadd.f32 %v637_v40, %v380_v44 }
 0x1e7   : > { %v385_v48 = vsel %vm384_vm6, %v637_v40, %v381_v46 }
 0x1e8   : > { %v390_v49 = vsel %vm387_vm7, %v389_v47, %v385_v48 }
 0x1e9   : > { %v393_v50 = vperm.slane %v390_v49, 0  ;;  %v392_v51 = vsub.f32 1.0, %v390_v49 }
 0x1eb   : > { %398 = vperm.xlu2 %629, %v393_v50   ;;  %v410_v52 = vperm.slane %v392_v51, 0 }
 0x1ed   : > { %421 = vperm.xlu1 %632, %v410_v52   ;;  %415 = vperm.xlu0 %631, %v410_v52  }
 0x1f3   : > { %630 = vset.pattern.permute.xlu2 %v402_v33 }
 0x1f5   : > { %633 = vset.pattern.permute.xlu0 %v402_v33 }
 0x1fb   : > { %404 = vperm.xlu2 %630, %v393_v50  }
 0x245   : > { %v399_v53 = vpop.permute.xlu2 %398 }
 0x246   : > { %v406_v55 = vmul.f32 %v399_v53, %v941_v2  ;;  %v407_v3 = vmul.f32 %v399_v53, %v945_v4 }
 0x255   : > { %v405_v54 = vpop.permute.xlu2 %404 }
 0x256   : > { %v408_v56 = vmul.f32 %v405_v54, %v953_v8  ;;  %v409_v57 = vmul.f32 %v405_v54, %v955_v9 }
 0x25f   : > { %v422_v58 = vpop.permute.xlu1 %421  ;;  %v416_v59 = vpop.permute.xlu0 %415 }
 0x260   : > { %v425_v60 = vmul.f32 %v422_v58, %v949_v6  ;;  %v426_v61 = vmul.f32 %v422_v58, %v951_v7  ;;  %v423_v62 = vmul.f32 %v416_v59, %v937_v0  ;;  %v424_v63 = vmul.f32 %v416_v59, %v939_v1 }
 0x262   : > { %v429_v2 = vadd.f32 %v425_v60, %v408_v56  ;;  %v430_v5 = vadd.f32 %v426_v61, %v409_v57  ;;  %v427_v8 = vadd.f32 %v423_v62, %v406_v55  ;;  %v428_v9 = vadd.f32 %v424_v63, %v407_v3 }
 0x264   : > { %433 = vst [vmem:[%s259_s20 + $0x10] sm:$0xff] %v429_v2 }
 0x265   : > { %434 = vst [vmem:[%s259_s20 + $0x18] sm:$0xff] %v430_v5 }
 0x266   : > { %431 = vst [vmem:[%s259_s20] sm:$0xff] %v427_v8 }
 0x267   : > { %432 = vst [vmem:[%s259_s20 + $0x8] sm:$0xff] %v428_v9 }
 0x268   : > { %725 = shalt.err (!%p722_p13)
}
 0x269   : > { %s772_s29 = smov 256   ;;  %s773_s25 = smov 16  }
 0x26a   : > { %578 = dma.vmem_to_hbm [thread:$0]  (%p848_p10), %s449_s24, 512, %s451_s19, %s436_s5, %s772_s29, %s772_s29, %s773_s25  }
 0x26b PF: > { %p592_p0 = scmp.ge.s32.totalorder %s768_s18, 2  ;;  %s465_s6 = sand.u32 1, %s756_s15  }
 0x26c   : > { %s466_s7 = scalar_lea.sflag [#allocation4], %s465_s6 }
 0x26d   : > { %p588_p4 = pnand %p592_p0, %p852_p11 }
 0x26f   : > { %p589_p5 = pneg %p588_p4 }
 0x271   : > { %751 = dma.done.wait (%p589_p5), %s466_s7, 512  }
 0x272   : > { %753 = vsyncadd (%p589_p5), %s466_s7, 4294966784  ;;  %s1028_s9 = sld [smem:[#allocation11_spill]]  ;;  %p20_p7 = scmp.ge.s32.totalorder %s824_s21, 6  }
 0x273   : > { %s1029_s15 = smov %s760_s16  ;;  %s1030_s16 = smov %s764_s17 }
 0x274   : > { %s1032_s18 = smov %s824_s21  ;;  %22 = sbr.rel (!%p20_p7) target bundleno = 9 (0x9), region = 95 }
 0x278   : > { %s1031_s17 = smov %s1028_s9 }
 0x279   :  { %472 = vsyncpa [#allocation3], 1 }
 0x27a   :  { %474 = vsyncpa [#allocation3 + $0x1], 1 }
 0x27b   :  { %475 = vsyncpa [#allocation6], 1 }
 0x27c   :  { %477 = vsyncpa [#allocation6 + $0x1], 1 }
 0x27d   :  { %478 = vsyncpa [#allocation4], 1 }
 0x27e   :  { %480 = vsyncpa [#allocation4 + $0x1], 1 }

</bundles_post_ra>
